<compile_context>
chip_gen: v6e
topology: v6e:2x2x1
jax: 0.10.0
libtpu: 0.0.40
codegen_flags: <defaults>
</compile_context>

<pallas_src>
import functools

import jax
import jax.numpy as jnp
from jax.experimental import pallas as pl
from jax.experimental.pallas import tpu as pltpu


def _mapping_act(y, activation):
    if activation == "tanh":
        return jnp.tanh(y)
    if activation == "sigmoid":
        return jax.nn.sigmoid(y)
    if activation == "relu":
        return jnp.maximum(y, 0.0)
    return y  # plain linear head


def _head_kernel_noprev(x_ref, w1t_ref, b1_ref, w2_ref, b2_ref, w3_ref, b3_ref,
                        out_ref, embed_ref, *, activation):
    # prev_embedding == zeros  =>  only the top half of W1 contributes.
    h1 = jnp.dot(x_ref[...], w1t_ref[...],
                 preferred_element_type=jnp.float32) + b1_ref[...]
    h1 = jnp.maximum(h1, 0.0)
    emb = jnp.dot(h1.astype(w2_ref.dtype), w2_ref[...],
                  preferred_element_type=jnp.float32) + b2_ref[...]
    emb = jnp.maximum(emb, 0.0)
    out = jnp.dot(emb.astype(w3_ref.dtype), w3_ref[...],
                  preferred_element_type=jnp.float32) + b3_ref[...]
    out = _mapping_act(out, activation)
    embed_ref[...] = emb.astype(embed_ref.dtype)
    out_ref[...] = out.astype(out_ref.dtype)


def _head_kernel_prev(x_ref, p_ref, w1t_ref, w1b_ref, b1_ref, w2_ref, b2_ref,
                      w3_ref, b3_ref, out_ref, embed_ref, *, activation):
    h1 = (jnp.dot(x_ref[...], w1t_ref[...], preferred_element_type=jnp.float32)
          + jnp.dot(p_ref[...], w1b_ref[...], preferred_element_type=jnp.float32)
          + b1_ref[...])
    h1 = jnp.maximum(h1, 0.0)
    emb = jnp.dot(h1.astype(w2_ref.dtype), w2_ref[...],
                  preferred_element_type=jnp.float32) + b2_ref[...]
    emb = jnp.maximum(emb, 0.0)
    out = jnp.dot(emb.astype(w3_ref.dtype), w3_ref[...],
                  preferred_element_type=jnp.float32) + b3_ref[...]
    out = _mapping_act(out, activation)
    embed_ref[...] = emb.astype(embed_ref.dtype)
    out_ref[...] = out.astype(out_ref.dtype)


def autoregressive_action_head(inp, params, prev_embedding=None, *,
                               activation="tanh", tile_m=1024, use_bf16=True):
    """Pallas implementation of AutoregressiveActionHead.forward.

    inp:            (B, S, E) float32
    prev_embedding: (B, S, E) float32 or None (treated as zeros, never read)
    params: dict with w1 (2E, 2H), b1 (2H,), w2 (2H, H), b2 (H,), w3 (H, O), b3 (O,)
    Returns (mapping_out (B, S, O), embed (B, S, H)).
    """
    B, S, E = inp.shape
    H = params["w2"].shape[1]
    O = params["w3"].shape[1]
    N = B * S

    # Row tile: multiple of 8 (sublane), capped so the grid keeps >= 2 steps
    # when possible (v7x has 2 TensorCores sharding the 'parallel' axis).
    cap = max(8, (-(-(-(-N // 2)) // 8)) * 8)          # round_up(ceil(N/2), 8)
    tm = max(8, min(int(tile_m), cap))
    tm = (tm // 8) * 8
    grid = (pl.cdiv(N, tm),)

    compute_dtype = jnp.bfloat16 if use_bf16 else inp.dtype

    # Free reshape (row-major); no concat, no zero-fill, no pad.
    x = inp.reshape(N, E).astype(compute_dtype)

    w1 = params["w1"]
    w1_top = w1[:E].astype(compute_dtype)               # (E, 2H)
    b1 = params["b1"].reshape(1, -1).astype(jnp.float32)
    w2 = params["w2"].astype(compute_dtype)
    b2 = params["b2"].reshape(1, -1).astype(jnp.float32)
    w3 = params["w3"].astype(compute_dtype)
    b3 = params["b3"].reshape(1, -1).astype(jnp.float32)

    def full2d(arr):     # weight/bias resident block (constant index_map)
        return pl.BlockSpec(arr.shape, lambda i: (0, 0))

    def row_spec(width):  # row-tiled activation/output block
        return pl.BlockSpec((tm, width), lambda i: (i, 0))

    out_shapes = (
        jax.ShapeDtypeStruct((N, O), inp.dtype),
        jax.ShapeDtypeStruct((N, H), inp.dtype),
    )
    out_specs = [row_spec(O), row_spec(H)]

    if prev_embedding is None:
        kernel = functools.partial(_head_kernel_noprev, activation=activation)
        in_specs = [row_spec(E), full2d(w1_top), full2d(b1),
                    full2d(w2), full2d(b2), full2d(w3), full2d(b3)]
        args = (x, w1_top, b1, w2, b2, w3, b3)
    else:
        prev = prev_embedding.reshape(N, H).astype(compute_dtype)
        w1_bot = w1[E:].astype(compute_dtype)            # (H, 2H)
        kernel = functools.partial(_head_kernel_prev, activation=activation)
        in_specs = [row_spec(E), row_spec(H), full2d(w1_top), full2d(w1_bot),
                    full2d(b1), full2d(w2), full2d(b2), full2d(w3), full2d(b3)]
        args = (x, prev, w1_top, w1_bot, b1, w2, b2, w3, b3)

    out, embed = pl.pallas_call(
        kernel,
        out_shape=out_shapes,
        grid_spec=pltpu.PrefetchScalarGridSpec(
            num_scalar_prefetch=0,
            grid=grid,
            in_specs=in_specs,
            out_specs=out_specs,
        ),
        compiler_params=pltpu.CompilerParams(
            dimension_semantics=("parallel",)),
    )(*args)

    return out.reshape(B, S, O), embed.reshape(B, S, H)


def init_params(key, embedding_size, output_size):
    """Deterministic init matching nn.Linear shapes (stored transposed as
    (in, out) so the kernel computes x @ W)."""
    H = embedding_size
    keys = jax.random.split(key, 6)

    def linear(kw, kb, fan_in, fan_out):
        bound = 1.0 / jnp.sqrt(fan_in)
        w = jax.random.uniform(kw, (fan_in, fan_out), jnp.float32, -bound, bound)
        b = jax.random.uniform(kb, (fan_out,), jnp.float32, -bound, bound)
        return w, b

    w1, b1 = linear(keys[0], keys[1], embedding_size + H, 2 * H)
    w2, b2 = linear(keys[2], keys[3], 2 * H, H)
    w3, b3 = linear(keys[4], keys[5], H, output_size)
    return {"w1": w1, "b1": b1, "w2": w2, "b2": b2, "w3": w3, "b3": b3}


def _reference(inp, params, prev_embedding=None, activation="tanh"):
    """Plain-JAX f32 reference for correctness."""
    if prev_embedding is None:
        prev_embedding = jnp.zeros_like(inp)
    x = jnp.concatenate([inp, prev_embedding], axis=2)
    h1 = jnp.maximum(x @ params["w1"] + params["b1"], 0.0)
    emb = jnp.maximum(h1 @ params["w2"] + params["b2"], 0.0)
    out = _mapping_act(emb @ params["w3"] + params["b3"], activation)
    return out, emb


if __name__ == "__main__":
    B, S, E, O = 2, 8, 32, 16
    key = jax.random.PRNGKey(0)
    k_x, k_p, k_prev = jax.random.split(key, 3)

    x = jax.random.normal(k_x, (B, S, E), jnp.float32)
    prev = jax.random.normal(k_prev, (B, S, E), jnp.float32)
    params = init_params(k_p, E, O)

    fwd = jax.jit(functools.partial(autoregressive_action_head,
                                    activation="tanh", tile_m=1024))

    # Case 1: prev_embedding=None (zeros half never materialized / read).
    out, embed = fwd(x, params)
    jax.block_until_ready((out, embed))
    ref_out, ref_embed = _reference(x, params)
    assert out.shape == (B, S, O) and embed.shape == (B, S, E)
    assert jnp.allclose(out, ref_out, atol=2e-2, rtol=2e-2)
    assert jnp.allclose(embed, ref_embed, atol=2e-2, rtol=2e-2)

    # Case 2: explicit prev_embedding (exercises the W1_bottom dot).
    out2, embed2 = fwd(x, params, prev)
    jax.block_until_ready((out2, embed2))
    ref_out2, ref_embed2 = _reference(x, params, prev)
    assert jnp.allclose(out2, ref_out2, atol=2e-2, rtol=2e-2)
    assert jnp.allclose(embed2, ref_embed2, atol=2e-2, rtol=2e-2)

    print("KERNEL_OK")
</pallas_src>

<mosaic_0001>
module attributes {stable_mosaic.version = 11 : i64} {
  func.func @_head_kernel_noprev(%arg0: i32, %arg1: memref<8x32xbf16, #tpu.memory_space<vmem>>, %arg2: memref<32x64xbf16, #tpu.memory_space<vmem>>, %arg3: memref<1x64xf32, #tpu.memory_space<vmem>>, %arg4: memref<64x32xbf16, #tpu.memory_space<vmem>>, %arg5: memref<1x32xf32, #tpu.memory_space<vmem>>, %arg6: memref<32x16xbf16, #tpu.memory_space<vmem>>, %arg7: memref<1x16xf32, #tpu.memory_space<vmem>>, %arg8: memref<8x16xf32, #tpu.memory_space<vmem>>, %arg9: memref<8x32xf32, #tpu.memory_space<vmem>>) attributes {dimension_semantics = [#tpu.dimension_semantics<parallel>], iteration_bounds = array<i64: 2>, scalar_prefetch = 0 : i64, scratch_operands = 0 : i64, tpu.core_type = #tpu.core_type<tc>, window_params = [{transform_indices = @transform_0, window_bounds = array<i64: 8, 32>}, {pipeline_mode = #tpu.pipeline_mode<synchronous>, transform_indices = @transform_1, window_bounds = array<i64: 32, 64>}, {pipeline_mode = #tpu.pipeline_mode<synchronous>, transform_indices = @transform_2, window_bounds = array<i64: 1, 64>}, {pipeline_mode = #tpu.pipeline_mode<synchronous>, transform_indices = @transform_3, window_bounds = array<i64: 64, 32>}, {pipeline_mode = #tpu.pipeline_mode<synchronous>, transform_indices = @transform_4, window_bounds = array<i64: 1, 32>}, {pipeline_mode = #tpu.pipeline_mode<synchronous>, transform_indices = @transform_5, window_bounds = array<i64: 32, 16>}, {pipeline_mode = #tpu.pipeline_mode<synchronous>, transform_indices = @transform_6, window_bounds = array<i64: 1, 16>}, {transform_indices = @transform_7, window_bounds = array<i64: 8, 16>}, {transform_indices = @transform_8, window_bounds = array<i64: 8, 32>}]} {
    %c0 = arith.constant 0 : index
    %c0_0 = arith.constant 0 : index
    %0 = vector.load %arg1[%c0, %c0_0] : memref<8x32xbf16, #tpu.memory_space<vmem>>, vector<8x32xbf16>
    %c0_1 = arith.constant 0 : index
    %c0_2 = arith.constant 0 : index
    %1 = vector.load %arg2[%c0_1, %c0_2] : memref<32x64xbf16, #tpu.memory_space<vmem>>, vector<32x64xbf16>
    %cst = arith.constant dense<0.000000e+00> : vector<8x64xf32>
    %2 = tpu.matmul %0, %1, %cst {dimension_numbers = #tpu.dot_dimension_numbers<[1], [0], [0], [1], [0, 0, 1, 1], [], []>} : vector<8x32xbf16>, vector<32x64xbf16>, vector<8x64xf32> -> vector<8x64xf32>
    %c0_3 = arith.constant 0 : index
    %c0_4 = arith.constant 0 : index
    %3 = vector.load %arg3[%c0_3, %c0_4] : memref<1x64xf32, #tpu.memory_space<vmem>>, vector<1x64xf32>
    %4 = vector.broadcast %3 : vector<1x64xf32> to vector<8x64xf32>
    %5 = arith.addf %2, %4 : vector<8x64xf32>
    %cst_5 = arith.constant 0.000000e+00 : f32
    %6 = vector.broadcast %cst_5 : f32 to vector<8x64xf32>
    %7 = arith.maximumf %5, %6 : vector<8x64xf32>
    %8 = arith.truncf %7 : vector<8x64xf32> to vector<8x64xbf16>
    %c0_6 = arith.constant 0 : index
    %c0_7 = arith.constant 0 : index
    %9 = vector.load %arg4[%c0_6, %c0_7] : memref<64x32xbf16, #tpu.memory_space<vmem>>, vector<64x32xbf16>
    %cst_8 = arith.constant dense<0.000000e+00> : vector<8x32xf32>
    %10 = tpu.matmul %8, %9, %cst_8 {dimension_numbers = #tpu.dot_dimension_numbers<[1], [0], [0], [1], [0, 0, 1, 1], [], []>} : vector<8x64xbf16>, vector<64x32xbf16>, vector<8x32xf32> -> vector<8x32xf32>
    %c0_9 = arith.constant 0 : index
    %c0_10 = arith.constant 0 : index
    %11 = vector.load %arg5[%c0_9, %c0_10] : memref<1x32xf32, #tpu.memory_space<vmem>>, vector<1x32xf32>
    %12 = vector.broadcast %11 : vector<1x32xf32> to vector<8x32xf32>
    %13 = arith.addf %10, %12 : vector<8x32xf32>
    %cst_11 = arith.constant 0.000000e+00 : f32
    %14 = vector.broadcast %cst_11 : f32 to vector<8x32xf32>
    %15 = arith.maximumf %13, %14 : vector<8x32xf32>
    %16 = arith.truncf %15 : vector<8x32xf32> to vector<8x32xbf16>
    %c0_12 = arith.constant 0 : index
    %c0_13 = arith.constant 0 : index
    %17 = vector.load %arg6[%c0_12, %c0_13] : memref<32x16xbf16, #tpu.memory_space<vmem>>, vector<32x16xbf16>
    %cst_14 = arith.constant dense<0.000000e+00> : vector<8x16xf32>
    %18 = tpu.matmul %16, %17, %cst_14 {dimension_numbers = #tpu.dot_dimension_numbers<[1], [0], [0], [1], [0, 0, 1, 1], [], []>} : vector<8x32xbf16>, vector<32x16xbf16>, vector<8x16xf32> -> vector<8x16xf32>
    %c0_15 = arith.constant 0 : index
    %c0_16 = arith.constant 0 : index
    %19 = vector.load %arg7[%c0_15, %c0_16] : memref<1x16xf32, #tpu.memory_space<vmem>>, vector<1x16xf32>
    %20 = vector.broadcast %19 : vector<1x16xf32> to vector<8x16xf32>
    %21 = arith.addf %18, %20 : vector<8x16xf32>
    %22 = math.tanh %21 : vector<8x16xf32>
    %c0_17 = arith.constant 0 : index
    %c0_18 = arith.constant 0 : index
    %23 = vector.load %arg9[%c0_17, %c0_18] : memref<8x32xf32, #tpu.memory_space<vmem>>, vector<8x32xf32>
    tpu.vector_store %arg9[%c0_17, %c0_18], %15 {strides = array<i32>} : memref<8x32xf32, #tpu.memory_space<vmem>>, vector<8x32xf32>,
    %c0_19 = arith.constant 0 : index
    %c0_20 = arith.constant 0 : index
    %24 = vector.load %arg8[%c0_19, %c0_20] : memref<8x16xf32, #tpu.memory_space<vmem>>, vector<8x16xf32>
    tpu.vector_store %arg8[%c0_19, %c0_20], %22 {strides = array<i32>} : memref<8x16xf32, #tpu.memory_space<vmem>>, vector<8x16xf32>,
    return
  }
  func.func @transform_0(%arg0: i32) -> (i32, i32) {
    %c0_i32 = arith.constant 0 : i32
    %c0_i32_0 = arith.constant 0 : i32
    return %arg0, %c0_i32 : i32, i32
  }
  func.func @transform_1(%arg0: i32) -> (i32, i32) {
    %c0_i32 = arith.constant 0 : i32
    %c0_i32_0 = arith.constant 0 : i32
    %c0_i32_1 = arith.constant 0 : i32
    return %c0_i32, %c0_i32_0 : i32, i32
  }
  func.func @transform_2(%arg0: i32) -> (i32, i32) {
    %c0_i32 = arith.constant 0 : i32
    %c0_i32_0 = arith.constant 0 : i32
    %c0_i32_1 = arith.constant 0 : i32
    return %c0_i32, %c0_i32_0 : i32, i32
  }
  func.func @transform_3(%arg0: i32) -> (i32, i32) {
    %c0_i32 = arith.constant 0 : i32
    %c0_i32_0 = arith.constant 0 : i32
    %c0_i32_1 = arith.constant 0 : i32
    return %c0_i32, %c0_i32_0 : i32, i32
  }
  func.func @transform_4(%arg0: i32) -> (i32, i32) {
    %c0_i32 = arith.constant 0 : i32
    %c0_i32_0 = arith.constant 0 : i32
    %c0_i32_1 = arith.constant 0 : i32
    return %c0_i32, %c0_i32_0 : i32, i32
  }
  func.func @transform_5(%arg0: i32) -> (i32, i32) {
    %c0_i32 = arith.constant 0 : i32
    %c0_i32_0 = arith.constant 0 : i32
    %c0_i32_1 = arith.constant 0 : i32
    return %c0_i32, %c0_i32_0 : i32, i32
  }
  func.func @transform_6(%arg0: i32) -> (i32, i32) {
    %c0_i32 = arith.constant 0 : i32
    %c0_i32_0 = arith.constant 0 : i32
    %c0_i32_1 = arith.constant 0 : i32
    return %c0_i32, %c0_i32_0 : i32, i32
  }
  func.func @transform_7(%arg0: i32) -> (i32, i32) {
    %c0_i32 = arith.constant 0 : i32
    %c0_i32_0 = arith.constant 0 : i32
    return %arg0, %c0_i32 : i32, i32
  }
  func.func @transform_8(%arg0: i32) -> (i32, i32) {
    %c0_i32 = arith.constant 0 : i32
    %c0_i32_0 = arith.constant 0 : i32
    return %arg0, %c0_i32 : i32, i32
  }
}

</mosaic_0001>

<bundles_post_ra>
// kernel: autoregressive_action_head.1
= control target key start
LH: loop header
LB: loop body
LE: loop exit
PB: predicated region body
PF: predicated region fallthrough
CT: control target
= control target key end

     0   :  { %s1084_s0 = inlined_call_operand.vmem [shape: bf16[16,32], index: 0, kind: input, shape index: {}]   ;;  %s1085_s1 = inlined_call_operand.vmem [shape: bf16[32,64], index: 1, kind: input, shape index: {}]   ;;  %s1086_s2 = inlined_call_operand.vmem [shape: f32[1,64], index: 2, kind: input, shape index: {}]   ;;  %s1087_s3 = inlined_call_operand.vmem [shape: bf16[64,32], index: 3, kind: input, shape index: {}]   ;;  %s1088_s4 = inlined_call_operand.vmem [shape: f32[1,32], index: 4, kind: input, shape index: {}]   ;;  %s1089_s5 = inlined_call_operand.vmem [shape: bf16[32,16], index: 5, kind: input, shape index: {}]   ;;  %s1090_s6 = inlined_call_operand.vmem [shape: f32[1,16], index: 6, kind: input, shape index: {}]   ;;  %s1091_s7 = inlined_call_operand.hbm [shape: f32[16,16], index: 7, kind: output, shape index: {0}]   ;;  %s1092_s8 = inlined_call_operand.hbm [shape: f32[16,32], index: 8, kind: output, shape index: {1}]  }
   0x1   :  { %1095 = sst [smem:[#allocation8_spill]] %s1084_s0 }
   0x2   :  { %14 = vsyncpa [#allocation3], 0 }
   0x3   :  { %16 = vsyncpa [#allocation3 + $0x1], 0 }
   0x4   :  { %17 = vsyncpa [#allocation5], 0 }
   0x5   :  { %19 = vsyncpa [#allocation5 + $0x1], 0  ;;  %s924_s27 = smov 0   ;;  %s926_s28 = smov 0  }
   0x6   :  { %s928_s29 = smov 0   ;;  %s930_s30 = smov 0  }
   0x7 LB: > { %s945_s9 = sadd.s32 4294967295, %s873_s30   ;;  %s661_s10 = sadd.s32 4294967294, %s873_s30   ;;  %s873_s30 = sphi %s930_s30, %s1104_s30   ;;  %s869_s29 = sphi %s928_s29, %s1103_s29   ;;  %s865_s28 = sphi %s926_s28, %s1102_s28   ;;  %s861_s27 = sphi %s924_s27, %s1101_s27  }
   0x8   : > { %s949_s11 = sadd.s32 1, %s873_s30   ;;  %s184_s12 = sadd.s32 1, %s869_s29 }
   0x9   : > { %s181_s13 = ssub.s32 %s873_s30, %s949_s11  ;;  %p194_p0 = scmp.ne.s32.totalorder %s869_s29, %s865_s28 }
   0xa   : > { %p182_p1 = scmp.eq.s32.totalorder %s181_s13, 0  ;;  %p195_p2 = scmp.eq.s32.totalorder %s945_s9, 1 }
   0xb   : > { %p200_p3 = scmp.ne.s32.totalorder %s865_s28, %s861_s27  ;;  %p201_p4 = scmp.eq.s32.totalorder %s661_s10, 1 }
   0xc   : > { %s960_s14 = scalar_select %p182_p1, %s869_s29, %s184_s12  }
   0xd   : > { %p962_p5 = por %p195_p2, %p194_p0  ;;  %p966_p6 = por %p201_p4, %p200_p3 }
   0xe   : > { %p664_p7 = scmp.ge.s32.totalorder %s873_s30, 1  ;;  %p270_p8 = scmp.lt.s32.totalorder %s873_s30, 3 }
  0x10   : > { %p271_p9 = pnand %p664_p7, %p270_p8 }
  0x11   : > { %p308_p10 = scmp.lt.s32.totalorder (!%p271_p9), %s945_s9, 1  ;;  %s1098_s0 = sld [smem:[#allocation8_spill]] (!%p271_p9) }
  0x12   : > { %274 = sbr.rel (%p271_p9) target bundleno = 652 (0x28c), region = 48  ;;  %s1009_s10 = sand.u32 (!%p271_p9), 1, %s865_s28  }
  0x13   : > { %s1093_s17 = sshll.u32 (!%p271_p9), %s1009_s10, 3  ;;  %s1094_s19 = sshll.u32 (!%p271_p9), %s945_s9, 7 }
  0x14   : > { %s307_s18 = scalar_lea.vmem (!%p271_p9), [#allocation4], %s1093_s17  ;;  %s568_s22 = scalar_lea.hbm (!%p271_p9), %s1092_s8, %s1094_s19 }
  0x15   : > { %s544_s24 = scalar_lea.sflag (!%p271_p9), [#allocation5], %s1009_s10 }
  0x17   : > { %v773_v0 = vld [vmem:[%s1085_s1 + $0x8] sm:$0xff]   ;;  %v875_v1 = vmov 0.0   ;;  %v774_v2 = vld [vmem:[%s1085_s1] sm:$0xff]   ;;  %vm876_vm0 = vmmov 0   ;;  %v775_v3 = vld [vmem:[%s1087_s3 + $0x18] sm:$0xff]   ;;  %s309_s23 = scalar_select %p308_p10, %s945_s9, 1 }
  0x18   : > { %699 = vmatprep.subr.bf16.mxu0 %v875_v1  ;;  %707 = vmatprep.subr.bf16.mxu1 %v875_v1  ;;  %v776_v4 = vld [vmem:[%s1087_s3 + $0x10] sm:$0xff]   ;;  %vm337_vm1 = vcmask 261120   ;;  %v777_v6 = vld [vmem:[%s1087_s3 + $0x8] sm:$0xff]   ;;  %v778_v7 = vld [vmem:[%s1087_s3] sm:$0xff]   ;;  %vm422_vm2 = vcmask 523264  }
  0x19   : > { %700 = vmatpush3.bf16.msra.mxu0 %v773_v0  ;;  %703 = vmatprep.mubr.msk.bf16.mxu0 %vm876_vm0, %v875_v1  ;;  %s667_s26 = sshll.u32 %s309_s23, 2  ;;  %v779_v8 = vld [vmem:[%s1089_s5 + $0x8] sm:$0xff]   ;;  %v668_v9 = vld [vmem:[%s1086_s2] ss:$0 sm:$0xff]  ;;  %s570_s23 = sshll.u32 %s307_s18, 4  ;;  %s571_s23 = int_to_ptr.vmem [resolvable:$true] %s570_s23 }
  0x1a   : > { %701 = vmatprep.subr.bf16.mxu0 %v875_v1  ;;  %715 = vmatprep.mubr.msk.bf16.mxu1 %vm876_vm0, %v875_v1  ;;  %s311_s13 = scalar_lea.vmem %s1098_s0, %s667_s26  ;;  %v780_v17 = vld [vmem:[%s1089_s5] sm:$0xff]   ;;  %s783_s25 = scalar_lea.vmem %s571_s23, 128 }
  0x1b   : > { %708 = vmatpush3.bf16.msra.mxu1 %v775_v3  ;;  %v313_v5 = vld [vmem:[%s311_s13] sm:$0xf]  ;;  %p784_p11 = scmp.ne.s32.totalorder %s571_s23, %s783_s25  ;;  %s877_s26 = smov [#allocation4]  }
  0x1c   : > { %709 = vmatprep.subr.bf16.mxu1 %v875_v1  ;;  %v672_v18 = vld [vmem:[%s1088_s4] ss:$0 sm:$0xff]  ;;  %s787_s12 = sshll.u32 %s877_s26, 4  ;;  %s788_s12 = int_to_ptr.vmem [resolvable:$false] %s787_s12 }
  0x1d   : > { %702 = vmatpush3.bf16.msra.mxu0 %v774_v2  ;;  %p785_p12 = pnand %p784_p11, %p962_p5  ;;  %s789_s13 = scalar_lea.vmem %s788_s12, 256 }
  0x1e   : > { %719 = vmatprep.subr.bf16.mxu0 %v875_v1  ;;  %p790_p0 = scmp.lt.s32.totalorder %s571_s23, %s788_s12  ;;  %p791_p1 = scmp.lt.s32.totalorder %s789_s13, %s783_s25 }
  0x1f   : > { %710 = vmatpush3.bf16.msra.mxu1 %v776_v4  ;;  %p786_p13 = pneg %p785_p12 }
  0x20   : > { %704 = vmatmul.mubr.msk.bf16.vlgmr.msra.gmra.mxu0 %vm337_vm1, %v313_v5  ;;  %711 = vmatprep.subr.bf16.mxu1 %v875_v1  ;;  %p792_p2 = por %p791_p1, %p790_p0 }
  0x21   : > { %723 = vmatprep.mubr.msk.bf16.mxu0 %vm876_vm0, %v875_v1  ;;  %720 = vmatpush3.bf16.msra.mxu0 %v779_v8 }
  0x22   : > { %721 = vmatprep.subr.bf16.mxu0 %v875_v1  ;;  %p793_p3 = pnand %p792_p2, %p786_p13 }
  0x23   : > { %712 = vmatpush3.bf16.msra.mxu1 %v777_v6 }
  0x24   : > { %713 = vmatprep.subr.bf16.mxu1 %v875_v1 }
  0x25   : > { %722 = vmatpush3.bf16.msra.mxu0 %v780_v17 }
  0x27   : > { %714 = vmatpush3.bf16.msra.mxu1 %v778_v7 }
  0xe0   : > { %v375_v10 = vpop.f32.mrf.mxu0 }
  0xe1   : > { %v376_v11 = vadd.f32 %v668_v9, %v375_v10 }
  0xe2   : > { %v705_v12 = vpop.f32.mrf.mxu0 }
  0xe3   : > { %v381_v13 = vmax.f32 %v376_v11, 0.0 }
  0xe4   : > { %v378_v14 = vpop.f32.mrf.mxu0 }
  0xe5   : > { %v382_v15 = vpack.c.bf16 %v381_v13, %v381_v13 }
  0xe6   : > { %v706_v16 = vpop.f32.mrf.mxu0 }
  0xe7   : > { %716 = vmatmul.mubr.msk.bf16.vlgmr.msra.gmra.mxu1 %vm422_vm2, %v382_v15 }
 0x1a7   : > { %v460_v19 = vpop.f32.mrf.mxu1 }
 0x1a8   : > { %v461_v20 = vadd.f32 %v672_v18, %v460_v19 }
 0x1a9   : > { %v717_v21 = vpop.f32.mrf.mxu1 }
 0x1aa   : > { %v466_v22 = vmax.f32 %v461_v20, 0.0 }
 0x1ab   : > { %v463_v23 = vpop.f32.mrf.mxu1 }
 0x1ac   : > { %v467_v24 = vpack.c.bf16 %v466_v22, %v466_v22  ;;  %535 = vst.msk [vmem:[%s307_s18] sm:$0xff] %vm337_vm1, %v466_v22 }
 0x1ad   : > { %v718_v25 = vpop.f32.mrf.mxu1 }
 0x1ae   : > { %724 = vmatmul.mubr.msk.bf16.vlgmr.msra.gmra.mxu0 %vm337_vm1, %v467_v24 }
 0x1af   : > { %796 = shalt.err (!%p793_p3)
}
 0x1b0   : > { %s797_s17 = scalar_lea.hbm %s568_s22, 128  ;;  %s801_s21 = scalar_lea.hbm %s1092_s8, 256 }
 0x1b1   : > { %p798_p4 = scmp.ne.s32.totalorder %s568_s22, %s797_s17  ;;  %p802_p9 = scmp.lt.s32.totalorder %s568_s22, %s1092_s8 }
 0x1b2   : > { %p803_p10 = scmp.lt.s32.totalorder %s801_s21, %s797_s17 }
 0x1b3   : > { %p799_p7 = pnand %p798_p4, %p962_p5 }
 0x1b4   : > { %p804_p11 = por %p803_p10, %p802_p9 }
 0x1b5   : > { %p800_p8 = pneg %p799_p7 }
 0x1b7   : > { %p805_p12 = pnand %p804_p11, %p800_p8 }
 0x1b9   : > { %808 = shalt.err (!%p805_p12)
}
 0x1ba   : > { %728 = dma.vmem_to_hbm [thread:$0]  (%p962_p5), %s571_s23, 128, %s568_s22, %s544_s24   ;;  %v678_v26 = vld [vmem:[%s1090_s6] ss:$0 sm:$0xff]  ;;  %vm536_vm3 = vcmask 130048  }
 0x1bb   : > { %s1099_s0 = sshll.u32 %s1009_s10, 3  ;;  %s1100_s12 = sshll.u32 %s945_s9, 7 }
 0x1bc   : > { %s300_s17 = scalar_lea.vmem [#allocation2], %s1099_s0  ;;  %s1048_s22 = scalar_lea.hbm %s1091_s7, %s1100_s12 }
 0x1bd   : > { %s557_s19 = sshll.u32 %s300_s17, 4  ;;  %s539_s23 = scalar_lea.sflag [#allocation3], %s1009_s10  ;;  %s558_s19 = int_to_ptr.vmem [resolvable:$true] %s557_s19 }
 0x1be   : > { %s809_s24 = scalar_lea.vmem %s558_s19, 128  ;;  %s878_s20 = smov [#allocation2]  }
 0x1bf   : > { %p810_p13 = scmp.ne.s32.totalorder %s558_s19, %s809_s24  ;;  %s813_s21 = sshll.u32 %s878_s20, 4  ;;  %s814_s21 = int_to_ptr.vmem [resolvable:$false] %s813_s21 }
 0x1c0   : > { %s815_s25 = scalar_lea.vmem %s814_s21, 256  ;;  %p816_p2 = scmp.lt.s32.totalorder %s558_s19, %s814_s21 }
 0x1c1   : > { %p811_p0 = pnand %p810_p13, %p962_p5  ;;  %p817_p3 = scmp.lt.s32.totalorder %s815_s25, %s809_s24 }
 0x1c3   : > { %p812_p1 = pneg %p811_p0  ;;  %p818_p4 = por %p817_p3, %p816_p2 }
 0x1c5   : > { %p819_p7 = pnand %p818_p4, %p812_p1 }
 0x26e   : > { %v528_v27 = vpop.f32.mrf.mxu0 }
 0x26f   : > { %v529_v28 = vadd.f32 %v678_v26, %v528_v27 }
 0x270   : > { %v725_v29 = vpop.f32.mrf.mxu0 }
 0x271   : > { %781 = vtanh.f32 %v529_v28 }
 0x272   : > { %v531_v30 = vpop.f32.mrf.mxu0 }
 0x274   : > { %v726_v31 = vpop.f32.mrf.mxu0 }
 0x27e   : > { %v782_v32 = vpop.eup %781 }
 0x27f   : > { %537 = vst.msk [vmem:[%s300_s17] sm:$0xff] %vm536_vm3, %v782_v32 }
 0x280   : > { %822 = shalt.err (!%p819_p7)
}
 0x281   : > { %s823_s9 = scalar_lea.hbm %s1048_s22, 128  ;;  %s827_s0 = scalar_lea.hbm %s1091_s7, 256 }
 0x282   : > { %p824_p8 = scmp.ne.s32.totalorder %s1048_s22, %s823_s9  ;;  %p828_p11 = scmp.lt.s32.totalorder %s1048_s22, %s1091_s7 }
 0x283   : > { %p829_p12 = scmp.lt.s32.totalorder %s827_s0, %s823_s9 }
 0x284   : > { %p825_p9 = pnand %p824_p8, %p962_p5 }
 0x285   : > { %p830_p13 = por %p829_p12, %p828_p11 }
 0x286   : > { %p826_p10 = pneg %p825_p9 }
 0x288   : > { %p831_p0 = pnand %p830_p13, %p826_p10 }
 0x28a   : > { %834 = shalt.err (!%p831_p0)
}
 0x28b   : > { %727 = dma.vmem_to_hbm [thread:$0]  (%p962_p5), %s558_s19, 128, %s1048_s22, %s539_s23  }
 0x28c PF: > { %p738_p1 = scmp.ge.s32.totalorder %s873_s30, 2  ;;  %s582_s13 = sand.u32 1, %s861_s27  }
 0x28d   : > { %s583_s18 = scalar_lea.sflag [#allocation3], %s582_s13 }
 0x28e   : > { %p732_p2 = pnand %p738_p1, %p966_p6 }
 0x290   : > { %p733_p3 = pneg %p732_p2 }
 0x292   : > { %852 = dma.done.wait (%p733_p3), %s583_s18, 128  }
 0x293   : > { %854 = vsyncadd (%p733_p3), %s583_s18, 4294967168  ;;  %s592_s24 = scalar_lea.sflag [#allocation5], %s582_s13 }
 0x294   : > { %856 = dma.done.wait (%p733_p3), %s592_s24, 128  }
 0x295   : > { %858 = vsyncadd (%p733_p3), %s592_s24, 4294967168  ;;  %p22_p5 = scmp.ge.s32.totalorder %s949_s11, 4   ;;  %s1101_s27 = smov %s865_s28 }
 0x296   : > { %s1102_s28 = smov %s869_s29  ;;  %s1103_s29 = smov %s960_s14 }
 0x297   : > { %s1104_s30 = smov %s949_s11  ;;  %24 = sbr.rel (!%p22_p5) target bundleno = 7 (0x7), region = 100 }
 0x29c   :  { %597 = vsyncpa [#allocation3], 1 }
 0x29d   :  { %599 = vsyncpa [#allocation3 + $0x1], 1 }
 0x29e   :  { %600 = vsyncpa [#allocation5], 1 }
 0x29f   :  { %602 = vsyncpa [#allocation5 + $0x1], 1 }

</bundles_post_ra>
